<compile_context>
chip_gen: v6e
topology: v6e:2x2x1
jax: 0.10.0
libtpu: 0.0.40
codegen_flags: <defaults>
</compile_context>

<pallas_src>
import jax
import jax.numpy as jnp
from jax.experimental import pallas as pl
from jax.experimental.pallas import tpu as pltpu


def _round_up(v, m):
    return (v + m - 1) // m * m


# -----------------------------------------------------------------------------
# Kernel
#   out[i, j] = (x[i] @ W1_folded) @ W2[:, j] + b2'[j]
# grid = (batch tiles, class tiles); class axis is innermost/"arbitrary" so the
# h scratch computed at j == 0 is valid for all j of the same batch tile.
# -----------------------------------------------------------------------------
def classblock_kernel(x_ref, w1_ref, w2_ref, b2_ref, out_ref, h_ref):
    # add_block: Linear with eval-BN scale folded into W1.  Compute once per
    # batch tile, cast to bf16 (halves vreg/VMEM pressure), reuse across C.
    @pl.when(pl.program_id(1) == 0)
    def _():
        h = jnp.dot(x_ref[...], w1_ref[...], preferred_element_type=jnp.float32)
        h_ref[...] = h.astype(h_ref.dtype)

    # classifier: Linear.  First-layer bias + BN shift already folded into b2.
    out = jnp.dot(h_ref[...], w2_ref[...], preferred_element_type=jnp.float32)
    out_ref[...] = (out + b2_ref[...]).astype(out_ref.dtype)


# -----------------------------------------------------------------------------
# One-time weight preparation (hoisted out of the forward path).
# -----------------------------------------------------------------------------
def prepare_class_block_params(params, *, compute_dtype=jnp.bfloat16,
                               block_c=2048, eps=1e-5):
    w1, b1, gamma, beta, r_mean, r_var, w2, b2 = params
    C = w2.shape[1]

    # y = ((x @ w1 + b1) - mean) * gamma / sqrt(var + eps) + beta
    #   =  x @ (w1 * s) + shift,   s = gamma * rsqrt(var + eps)
    #   shift = (b1 - mean) * s + beta
    scale = gamma.astype(jnp.float32) * jax.lax.rsqrt(r_var.astype(jnp.float32) + eps)
    w1f = w1.astype(jnp.float32) * scale                               # (D, NB)
    shift = (b1.astype(jnp.float32) - r_mean.astype(jnp.float32)) * scale \
            + beta.astype(jnp.float32)                                 # (1, NB)

    # Pad the class dim lane-dense (multiple of 128 and of the C tile).
    block_c = _round_up(block_c, 128)
    C_pad = _round_up(C, 128)
    tC = min(block_c, C_pad)
    C_pad = _round_up(C_pad, tC)
    w2f = jnp.pad(w2.astype(jnp.float32), ((0, 0), (0, C_pad - C)))
    b2f = jnp.pad(b2.astype(jnp.float32), ((0, 0), (0, C_pad - C)))

    # Fold the bottleneck shift through the classifier: b2' = b2 + shift @ W2.
    b2_fold = b2f + shift @ w2f                                        # (1, C_pad) f32

    # TODO(synk): if running_var can be pathologically small, keep W1 unscaled
    # in bf16 and apply `scale` to the f32 accumulator in-kernel instead (the
    # bf16 rounding of the scaled W1 is the only approximation made here).
    return {
        "w1": w1f.astype(compute_dtype),   # (D, NB)   bf16, BN scale folded
        "w2": w2f.astype(compute_dtype),   # (NB, C_pad) bf16
        "b2": b2_fold,                     # (1, C_pad) f32, b1/BN shift folded
        "class_num": C,
        "block_c": tC,
    }


def _pick_batch_tile(B, block_b, sublane):
    """Batch tile: multiple of the bf16 sublane pack, >= 2 grid steps when B allows
    (so the 'parallel' axis actually uses both v7x TensorCores)."""
    if _round_up(B, sublane) <= sublane:
        return sublane
    half = _round_up((B + 1) // 2, sublane)
    return max(sublane, min(_round_up(block_b, sublane), half))


# -----------------------------------------------------------------------------
# Forward wrapper
# -----------------------------------------------------------------------------
def class_block_forward(x, prepared, *, block_b=512, out_dtype=jnp.bfloat16,
                        vmem_limit_bytes=48 * 1024 * 1024):
    """x: (B, input_dim) -> logits: (B, class_num) in `out_dtype`."""
    w1b, w2b, b2b = prepared["w1"], prepared["w2"], prepared["b2"]
    C = prepared["class_num"]
    tC = prepared["block_c"]
    compute_dtype = w1b.dtype

    B, D = x.shape
    NB = w1b.shape[1]
    C_pad = w2b.shape[1]

    sublane = 16 if compute_dtype == jnp.bfloat16 else 8
    tB = _pick_batch_tile(B, block_b, sublane)
    B_pad = _round_up(B, tB)

    # Avoid extra HBM passes: cast only if needed, pad only if needed.
    xp = x if x.dtype == compute_dtype else x.astype(compute_dtype)
    if B_pad != B:
        xp = jnp.pad(xp, ((0, B_pad - B), (0, 0)))

    grid = (B_pad // tB, C_pad // tC)

    flops = 2 * B_pad * NB * (D + C_pad)
    bytes_accessed = (xp.size * xp.dtype.itemsize
                      + w1b.size * w1b.dtype.itemsize
                      + w2b.size * w2b.dtype.itemsize
                      + b2b.size * b2b.dtype.itemsize
                      + B_pad * C_pad * jnp.dtype(out_dtype).itemsize)
    cost = pl.CostEstimate(flops=flops, transcendentals=0,
                           bytes_accessed=bytes_accessed)

    def make_call(w1_single_buffer):
        # W1 block never changes across the grid; single-buffer it when supported.
        w1_kw = {"pipeline_mode": pl.Buffered(1)} if w1_single_buffer else {}
        return pl.pallas_call(
            classblock_kernel,
            out_shape=jax.ShapeDtypeStruct((B_pad, C_pad), out_dtype),
            grid_spec=pltpu.PrefetchScalarGridSpec(
                num_scalar_prefetch=0,
                grid=grid,
                in_specs=[
                    pl.BlockSpec((tB, D), lambda i, j: (i, 0)),           # x tile
                    pl.BlockSpec((D, NB), lambda i, j: (0, 0), **w1_kw),  # W1 resident
                    pl.BlockSpec((NB, tC), lambda i, j: (0, j)),          # W2 streamed over C
                    pl.BlockSpec((1, tC), lambda i, j: (0, j)),           # folded bias
                ],
                out_specs=pl.BlockSpec((tB, tC), lambda i, j: (i, j)),
                scratch_shapes=[pltpu.VMEM((tB, NB), compute_dtype)],     # h (reused over C)
            ),
            compiler_params=pltpu.CompilerParams(
                dimension_semantics=("parallel", "arbitrary"),
                vmem_limit_bytes=vmem_limit_bytes,
            ),
            cost_estimate=cost,
        )

    try:
        out = make_call(True)(xp, w1b, w2b, b2b)
    except Exception:
        # pl.Buffered(1) unsupported on this jax/Mosaic version: fall back to
        # default double-buffering of W1 (costs one extra W1-sized VMEM buffer).
        out = make_call(False)(xp, w1b, w2b, b2b)

    return out[:B, :C]


# -----------------------------------------------------------------------------
# Deterministic init mirroring weights_init_kaiming / weights_init_classifier
# -----------------------------------------------------------------------------
def init_params(key, input_dim, num_bottleneck, class_num):
    k1, k2, k3 = jax.random.split(key, 3)
    # Linear(input_dim, num_bottleneck): kaiming_normal_, mode='fan_out'
    #   (stored transposed as (in, out) so the kernel computes x @ W).
    std1 = (2.0 / num_bottleneck) ** 0.5
    w1 = jax.random.normal(k1, (input_dim, num_bottleneck), jnp.float32) * std1
    b1 = jnp.zeros((1, num_bottleneck), jnp.float32)
    # BatchNorm1d: weight ~ N(1, 0.02), bias = 0, running stats (0, 1)
    gamma = 1.0 + 0.02 * jax.random.normal(k2, (1, num_bottleneck), jnp.float32)
    beta = jnp.zeros((1, num_bottleneck), jnp.float32)
    r_mean = jnp.zeros((1, num_bottleneck), jnp.float32)
    r_var = jnp.ones((1, num_bottleneck), jnp.float32)
    # classifier Linear: weight ~ N(0, 0.001), bias 0
    w2 = 0.001 * jax.random.normal(k3, (num_bottleneck, class_num), jnp.float32)
    b2 = jnp.zeros((1, class_num), jnp.float32)
    return (w1, b1, gamma, beta, r_mean, r_var, w2, b2)


def reference_forward(x, params, eps=1e-5):
    """Plain-JAX f32 reference (un-folded eval-mode BN)."""
    w1, b1, gamma, beta, r_mean, r_var, w2, b2 = params
    h = x @ w1 + b1
    h = (h - r_mean) * jax.lax.rsqrt(r_var + eps) * gamma + beta
    return h @ w2 + b2


if __name__ == "__main__":
    # Small deterministic shapes (realistic ft_net sizes are D=2048, NB=512,
    # C~751+ with B in the hundreds).
    B, input_dim, num_bottleneck, class_num = 32, 64, 64, 200
    key = jax.random.PRNGKey(0)
    kx, kp, kb, km, kv = jax.random.split(key, 5)
    x = jax.random.normal(kx, (B, input_dim), jnp.float32)

    params = list(init_params(kp, input_dim, num_bottleneck, class_num))
    # Perturb first bias / BN running stats so the algebraic folds are exercised.
    params[1] = 0.05 * jax.random.normal(kb, (1, num_bottleneck), jnp.float32)  # b1
    params[4] = 0.10 * jax.random.normal(km, (1, num_bottleneck), jnp.float32)  # running_mean
    params[5] = 0.5 + jax.random.uniform(kv, (1, num_bottleneck), jnp.float32)  # running_var
    params = tuple(params)

    # block_c=128 -> the class axis is tiled (2 steps); the batch tile picker
    # gives tB=16 -> 2 batch steps, so both grid axes and the h-scratch reuse
    # under @pl.when(j == 0) are exercised even at these tiny shapes.
    prepared = prepare_class_block_params(params, block_c=128)
    out = class_block_forward(x, prepared)
    out = jax.block_until_ready(out)

    ref = reference_forward(x, params)
    assert out.shape == (B, class_num), out.shape
    out_f32 = out.astype(jnp.float32)
    # bf16 MXU passes / bf16 logits vs f32 reference: ~1e-2 relative agreement.
    assert jnp.allclose(out_f32, ref, rtol=2e-2, atol=2e-3), (
        float(jnp.max(jnp.abs(out_f32 - ref))))
    print("KERNEL_OK")
</pallas_src>

<mosaic_0001>
module attributes {stable_mosaic.version = 11 : i64} {
  func.func @classblock_kernel(%arg0: i32, %arg1: i32, %arg2: memref<16x64xbf16, #tpu.memory_space<vmem>>, %arg3: memref<64x64xbf16, #tpu.memory_space<vmem>>, %arg4: memref<64x128xbf16, #tpu.memory_space<vmem>>, %arg5: memref<1x128xf32, #tpu.memory_space<vmem>>, %arg6: memref<16x128xbf16, #tpu.memory_space<vmem>>, %arg7: memref<16x64xbf16, #tpu.memory_space<vmem>>) attributes {dimension_semantics = [#tpu.dimension_semantics<parallel>, #tpu.dimension_semantics<arbitrary>], iteration_bounds = array<i64: 2, 2>, scalar_prefetch = 0 : i64, scratch_operands = 1 : i64, tpu.core_type = #tpu.core_type<tc>, window_params = [{transform_indices = @transform_0, window_bounds = array<i64: 16, 64>}, {pipeline_mode = #tpu.pipeline_mode<synchronous>, transform_indices = @transform_1, window_bounds = array<i64: 64, 64>}, {transform_indices = @transform_2, window_bounds = array<i64: 64, 128>}, {transform_indices = @transform_3, window_bounds = array<i64: 1, 128>}, {transform_indices = @transform_4, window_bounds = array<i64: 16, 128>}]} {
    %c0_i32 = arith.constant 0 : i32
    %0 = arith.cmpi eq, %arg1, %c0_i32 : i32
    %1 = arith.extui %0 : i1 to i32
    %c0_i32_0 = arith.constant 0 : i32
    %2 = arith.cmpi ne, %1, %c0_i32_0 : i32
    scf.if %2 {
      %c0_8 = arith.constant 0 : index
      %c0_9 = arith.constant 0 : index
      %11 = vector.load %arg2[%c0_8, %c0_9] : memref<16x64xbf16, #tpu.memory_space<vmem>>, vector<16x64xbf16>
      %c0_10 = arith.constant 0 : index
      %c0_11 = arith.constant 0 : index
      %12 = vector.load %arg3[%c0_10, %c0_11] : memref<64x64xbf16, #tpu.memory_space<vmem>>, vector<64x64xbf16>
      %cst_12 = arith.constant dense<0.000000e+00> : vector<16x64xf32>
      %13 = tpu.matmul %11, %12, %cst_12 {dimension_numbers = #tpu.dot_dimension_numbers<[1], [0], [0], [1], [0, 0, 1, 1], [], []>} : vector<16x64xbf16>, vector<64x64xbf16>, vector<16x64xf32> -> vector<16x64xf32>
      %14 = arith.truncf %13 : vector<16x64xf32> to vector<16x64xbf16>
      %c0_13 = arith.constant 0 : index
      %c0_14 = arith.constant 0 : index
      %15 = vector.load %arg7[%c0_13, %c0_14] : memref<16x64xbf16, #tpu.memory_space<vmem>>, vector<16x64xbf16>
      tpu.vector_store %arg7[%c0_13, %c0_14], %14 {strides = array<i32>} : memref<16x64xbf16, #tpu.memory_space<vmem>>, vector<16x64xbf16>,
    } else {
    }
    %c0 = arith.constant 0 : index
    %c0_1 = arith.constant 0 : index
    %3 = vector.load %arg7[%c0, %c0_1] : memref<16x64xbf16, #tpu.memory_space<vmem>>, vector<16x64xbf16>
    %c0_2 = arith.constant 0 : index
    %c0_3 = arith.constant 0 : index
    %4 = vector.load %arg4[%c0_2, %c0_3] : memref<64x128xbf16, #tpu.memory_space<vmem>>, vector<64x128xbf16>
    %cst = arith.constant dense<0.000000e+00> : vector<16x128xf32>
    %5 = tpu.matmul %3, %4, %cst {dimension_numbers = #tpu.dot_dimension_numbers<[1], [0], [0], [1], [0, 0, 1, 1], [], []>} : vector<16x64xbf16>, vector<64x128xbf16>, vector<16x128xf32> -> vector<16x128xf32>
    %c0_4 = arith.constant 0 : index
    %c0_5 = arith.constant 0 : index
    %6 = vector.load %arg5[%c0_4, %c0_5] : memref<1x128xf32, #tpu.memory_space<vmem>>, vector<1x128xf32>
    %7 = vector.broadcast %6 : vector<1x128xf32> to vector<16x128xf32>
    %8 = arith.addf %5, %7 : vector<16x128xf32>
    %9 = arith.truncf %8 : vector<16x128xf32> to vector<16x128xbf16>
    %c0_6 = arith.constant 0 : index
    %c0_7 = arith.constant 0 : index
    %10 = vector.load %arg6[%c0_6, %c0_7] : memref<16x128xbf16, #tpu.memory_space<vmem>>, vector<16x128xbf16>
    tpu.vector_store %arg6[%c0_6, %c0_7], %9 {strides = array<i32>} : memref<16x128xbf16, #tpu.memory_space<vmem>>, vector<16x128xbf16>,
    return
  }
  func.func @transform_0(%arg0: i32, %arg1: i32) -> (i32, i32) {
    %c0_i32 = arith.constant 0 : i32
    %c0_i32_0 = arith.constant 0 : i32
    return %arg0, %c0_i32 : i32, i32
  }
  func.func @transform_1(%arg0: i32, %arg1: i32) -> (i32, i32) {
    %c0_i32 = arith.constant 0 : i32
    %c0_i32_0 = arith.constant 0 : i32
    %c0_i32_1 = arith.constant 0 : i32
    return %c0_i32, %c0_i32_0 : i32, i32
  }
  func.func @transform_2(%arg0: i32, %arg1: i32) -> (i32, i32) {
    %c0_i32 = arith.constant 0 : i32
    %c0_i32_0 = arith.constant 0 : i32
    return %c0_i32, %arg1 : i32, i32
  }
  func.func @transform_3(%arg0: i32, %arg1: i32) -> (i32, i32) {
    %c0_i32 = arith.constant 0 : i32
    %c0_i32_0 = arith.constant 0 : i32
    return %c0_i32, %arg1 : i32, i32
  }
  func.func @transform_4(%arg0: i32, %arg1: i32) -> (i32, i32) {
    %c0_i32 = arith.constant 0 : i32
    return %arg0, %arg1 : i32, i32
  }
}

module attributes {stable_mosaic.version = 11 : i64} {
  func.func @classblock_kernel(%arg0: i32, %arg1: i32, %arg2: memref<16x64xbf16, #tpu.memory_space<vmem>>, %arg3: memref<64x64xbf16, #tpu.memory_space<vmem>>, %arg4: memref<64x128xbf16, #tpu.memory_space<vmem>>, %arg5: memref<1x128xf32, #tpu.memory_space<vmem>>, %arg6: memref<16x128xbf16, #tpu.memory_space<vmem>>, %arg7: memref<16x64xbf16, #tpu.memory_space<vmem>>) attributes {dimension_semantics = [#tpu.dimension_semantics<parallel>, #tpu.dimension_semantics<arbitrary>], iteration_bounds = array<i64: 2, 2>, scalar_prefetch = 0 : i64, scratch_operands = 1 : i64, tpu.core_type = #tpu.core_type<tc>, window_params = [{transform_indices = @transform_0, window_bounds = array<i64: 16, 64>}, {pipeline_mode = #tpu.pipeline_mode<synchronous>, transform_indices = @transform_1, window_bounds = array<i64: 64, 64>}, {transform_indices = @transform_2, window_bounds = array<i64: 64, 128>}, {transform_indices = @transform_3, window_bounds = array<i64: 1, 128>}, {transform_indices = @transform_4, window_bounds = array<i64: 16, 128>}]} {
    %c0_i32 = arith.constant 0 : i32
    %0 = arith.cmpi eq, %arg1, %c0_i32 : i32
    %1 = arith.extui %0 : i1 to i32
    %c0_i32_0 = arith.constant 0 : i32
    %2 = arith.cmpi ne, %1, %c0_i32_0 : i32
    scf.if %2 {
      %c0_8 = arith.constant 0 : index
      %c0_9 = arith.constant 0 : index
      %11 = vector.load %arg2[%c0_8, %c0_9] : memref<16x64xbf16, #tpu.memory_space<vmem>>, vector<16x64xbf16>
      %c0_10 = arith.constant 0 : index
      %c0_11 = arith.constant 0 : index
      %12 = vector.load %arg3[%c0_10, %c0_11] : memref<64x64xbf16, #tpu.memory_space<vmem>>, vector<64x64xbf16>
      %cst_12 = arith.constant dense<0.000000e+00> : vector<16x64xf32>
      %13 = tpu.matmul %11, %12, %cst_12 {dimension_numbers = #tpu.dot_dimension_numbers<[1], [0], [0], [1], [0, 0, 1, 1], [], []>} : vector<16x64xbf16>, vector<64x64xbf16>, vector<16x64xf32> -> vector<16x64xf32>
      %14 = arith.truncf %13 : vector<16x64xf32> to vector<16x64xbf16>
      %c0_13 = arith.constant 0 : index
      %c0_14 = arith.constant 0 : index
      %15 = vector.load %arg7[%c0_13, %c0_14] : memref<16x64xbf16, #tpu.memory_space<vmem>>, vector<16x64xbf16>
      tpu.vector_store %arg7[%c0_13, %c0_14], %14 {strides = array<i32>} : memref<16x64xbf16, #tpu.memory_space<vmem>>, vector<16x64xbf16>,
    } else {
    }
    %c0 = arith.constant 0 : index
    %c0_1 = arith.constant 0 : index
    %3 = vector.load %arg7[%c0, %c0_1] : memref<16x64xbf16, #tpu.memory_space<vmem>>, vector<16x64xbf16>
    %c0_2 = arith.constant 0 : index
    %c0_3 = arith.constant 0 : index
    %4 = vector.load %arg4[%c0_2, %c0_3] : memref<64x128xbf16, #tpu.memory_space<vmem>>, vector<64x128xbf16>
    %cst = arith.constant dense<0.000000e+00> : vector<16x128xf32>
    %5 = tpu.matmul %3, %4, %cst {dimension_numbers = #tpu.dot_dimension_numbers<[1], [0], [0], [1], [0, 0, 1, 1], [], []>} : vector<16x64xbf16>, vector<64x128xbf16>, vector<16x128xf32> -> vector<16x128xf32>
    %c0_4 = arith.constant 0 : index
    %c0_5 = arith.constant 0 : index
    %6 = vector.load %arg5[%c0_4, %c0_5] : memref<1x128xf32, #tpu.memory_space<vmem>>, vector<1x128xf32>
    %7 = vector.broadcast %6 : vector<1x128xf32> to vector<16x128xf32>
    %8 = arith.addf %5, %7 : vector<16x128xf32>
    %9 = arith.truncf %8 : vector<16x128xf32> to vector<16x128xbf16>
    %c0_6 = arith.constant 0 : index
    %c0_7 = arith.constant 0 : index
    %10 = vector.load %arg6[%c0_6, %c0_7] : memref<16x128xbf16, #tpu.memory_space<vmem>>, vector<16x128xbf16>
    tpu.vector_store %arg6[%c0_6, %c0_7], %9 {strides = array<i32>} : memref<16x128xbf16, #tpu.memory_space<vmem>>, vector<16x128xbf16>,
    return
  }
  func.func @transform_0(%arg0: i32, %arg1: i32) -> (i32, i32) {
    %c0_i32 = arith.constant 0 : i32
    %c0_i32_0 = arith.constant 0 : i32
    return %arg0, %c0_i32 : i32, i32
  }
  func.func @transform_1(%arg0: i32, %arg1: i32) -> (i32, i32) {
    %c0_i32 = arith.constant 0 : i32
    %c0_i32_0 = arith.constant 0 : i32
    %c0_i32_1 = arith.constant 0 : i32
    return %c0_i32, %c0_i32_0 : i32, i32
  }
  func.func @transform_2(%arg0: i32, %arg1: i32) -> (i32, i32) {
    %c0_i32 = arith.constant 0 : i32
    %c0_i32_0 = arith.constant 0 : i32
    return %c0_i32, %arg1 : i32, i32
  }
  func.func @transform_3(%arg0: i32, %arg1: i32) -> (i32, i32) {
    %c0_i32 = arith.constant 0 : i32
    %c0_i32_0 = arith.constant 0 : i32
    return %c0_i32, %arg1 : i32, i32
  }
  func.func @transform_4(%arg0: i32, %arg1: i32) -> (i32, i32) {
    %c0_i32 = arith.constant 0 : i32
    return %arg0, %arg1 : i32, i32
  }
}

</mosaic_0001>

<bundles_post_ra>
// kernel: tpu_custom_call.1
= control target key start
LH: loop header
LB: loop body
LE: loop exit
PB: predicated region body
PF: predicated region fallthrough
CT: control target
= control target key end

     0   :  { %s1520_s0 = inlined_call_operand.hbm [shape: bf16[32,64], index: 0, kind: input, shape index: {}]   ;;  %s1521_s1 = inlined_call_operand.hbm [shape: bf16[64,64], index: 1, kind: input, shape index: {}]   ;;  %s1522_s2 = inlined_call_operand.hbm [shape: bf16[64,256], index: 2, kind: input, shape index: {}]   ;;  %s1523_s3 = inlined_call_operand.vmem [shape: f32[1,256], index: 3, kind: input, shape index: {}]   ;;  %s1524_s4 = inlined_call_operand.hbm [shape: bf16[32,256], index: 4, kind: output, shape index: {}]  }
   0x1   :  { %1537 = sst [smem:[#allocation21_spill]] %s1520_s0 }
   0x2   :  { %1538 = sst [smem:[#allocation22_spill]] %s1521_s1 }
   0x3   :  { %1539 = sst [smem:[#allocation23_spill]] %s1522_s2 }
   0x4   :  { %1540 = sst [smem:[#allocation24_spill]] %s1523_s3 }
   0x5   :  { %1541 = sst [smem:[#allocation25_spill]] %s1524_s4 }
   0x6   :  { %9 = vsyncpa [#allocation4], 0 }
   0x7   :  { %11 = vsyncpa [#allocation4 + $0x1], 0 }
   0x8   :  { %12 = vsyncpa [#allocation7], 0 }
   0x9   :  { %13 = vsyncpa [#allocation5], 0 }
   0xa   :  { %15 = vsyncpa [#allocation5 + $0x1], 0  ;;  %s1160_s15 = smov 0   ;;  %s1162_s16 = smov 0  }
   0xb   :  { %s1164_s17 = smov 0   ;;  %s1166_s18 = smov 0  }
   0xc   :  { %s1168_s19 = smov 0   ;;  %s1170_s20 = smov 0  }
   0xd   :  { %s1172_s21 = smov 0   ;;  %s1174_s22 = smov 0  }
   0xe   :  { %s1176_s23 = smov 0   ;;  %s1178_s24 = smov 0  }
   0xf   :  { %s1180_s25 = smov 0   ;;  %s1182_s26 = smov 0  }
  0x10   :  { %s1184_s27 = smov 0   ;;  %s1186_s28 = smov 0  }
  0x11 LB: > { %1542 = sst [smem:[#allocation14_spill]] %s1103_s24  ;;  %s30_s29 = sadd.s32 1, %s1111_s26  ;;  %s1119_s28 = sphi %s1186_s28, %s21_s28   ;;  %s1115_s27 = sphi %s1184_s27, %s1579_s27   ;;  %s1111_s26 = sphi %s1182_s26, %s1578_s26   ;;  %s1107_s25 = sphi %s1180_s25, %s1577_s25   ;;  %s1103_s24 = sphi %s1178_s24, %s1576_s24   ;;  %s1099_s23 = sphi %s1176_s23, %s1588_s23   ;;  %s1095_s22 = sphi %s1174_s22, %s1587_s22   ;;  %s1091_s21 = sphi %s1172_s21, %s1586_s21   ;;  %s1087_s20 = sphi %s1170_s20, %s1585_s20   ;;  %s1083_s19 = sphi %s1168_s19, %s1584_s19   ;;  %s1079_s18 = sphi %s1166_s18, %s1583_s18   ;;  %s1075_s17 = sphi %s1164_s17, %s1582_s17   ;;  %s1071_s16 = sphi %s1162_s16, %s1581_s16   ;;  %s1067_s15 = sphi %s1160_s15, %s1580_s15  }
  0x12   : > { %1543 = sst [smem:[#allocation15_spill]] %s1107_s25  ;;  %s33_s30 = sadd.s32 1, %s1115_s27 }
  0x13   : > { %1544 = sst [smem:[#allocation16_spill]] %s1111_s26  ;;  %p31_p0 = scmp.ge.s32.totalorder %s30_s29, 2 }
  0x14   : > { %1545 = sst [smem:[#allocation17_spill]] %s1115_s27  ;;  %s40_s5 = sadd.s32 1, %s1099_s23 }
  0x15   : > { %p47_p1 = scmp.ne.s32.totalorder %s1099_s23, %s1095_s22  ;;  %p48_p2 = scmp.eq.s32.totalorder %s1119_s28, 0 }
  0x16   : > { %s1590_s29 = smov (%p31_p0, %s30_s29), 0  ;;  %s1592_s30 = smov (!%p31_p0, %s33_s30), %s1115_s27 }
  0x17   : > { %1546 = sst [smem:[#allocation18_spill]] %s1590_s29  ;;  %p1241_p3 = por %p48_p2, %p47_p1 }
  0x18   : > { %s1247_s7 = ssub.s32 %s1111_s26, %s1590_s29  ;;  %p35_p4 = scmp.ge.s32.totalorder %s1592_s30, 2 }
  0x19   : > { %p85_p5 = scmp.eq.s32.totalorder %s1247_s7, 0  ;;  %s141_s8 = sadd.s32 1, %s1075_s17 }
  0x1a   : > { %s1594_s30 = smov (%p35_p4, %s1592_s30), 0  ;;  %p749_p6 = scmp.lt.s32.totalorder %s1119_s28, 4 }
  0x1b   : > { %1548 = sst [smem:[#allocation19_spill]] %s1594_s30  ;;  %s37_s9 = ssub.s32 %s1115_s27, %s1594_s30 }
  0x1c   : > { %p38_p7 = scmp.eq.s32.totalorder %s37_s9, 0  ;;  %s138_s10 = sor.u32 %s1247_s7, %s37_s9 }
  0x1d   : > { %p139_p8 = scmp.eq.s32.totalorder %s138_s10, 0  ;;  %s191_s11 = sand.u32 1, %s1119_s28  }
  0x1e   : > { %s1259_s12 = scalar_select %p38_p7, %s1099_s23, %s40_s5  }
  0x1f   : > { %s1262_s13 = scalar_select %p139_p8, %s1075_s17, %s141_s8  }
  0x20   : > { %1549 = sst [smem:[#allocation20_spill]] %s1259_s12  ;;  %s193_s14 = sand.u32 1, %s1099_s23  }
  0x21   : > { %s644_s29 = sshll.u32 %s193_s14, 3  ;;  %s678_s4 = sshll.u32 %s1115_s27, 7 }
  0x22   : > { %s1550_s0 = sld [smem:[#allocation21_spill]]  ;;  %s195_s1 = scalar_lea.vmem [#allocation3], %s644_s29 }
  0x23   : > { %s202_s2 = sshll.u32 %s195_s1, 4  ;;  %p1273_p9 = pnand %p749_p6, %p1241_p3  ;;  %s203_s2 = int_to_ptr.vmem [resolvable:$true] %s202_s2 }
  0x24   : > { %s1277_s5 = scalar_lea.sflag [#allocation4], %s191_s11  ;;  %s898_s8 = scalar_lea.vmem %s203_s2, 128 }
  0x25   : > { %p887_p10 = pneg %p1273_p9  ;;  %p899_p11 = scmp.ne.s32.totalorder %s203_s2, %s898_s8 }
  0x26   : > { %s1121_s3 = smov [#allocation3]  }
  0x27   : > { %p901_p12 = pnand %p899_p11, %p887_p10 }
  0x28   : > { %s201_s24 = scalar_lea.hbm %s1550_s0, %s678_s4  ;;  %s903_s4 = sshll.u32 %s1121_s3, 4  ;;  %s904_s4 = int_to_ptr.vmem [resolvable:$false] %s903_s4 }
  0x29   : > { %p902_p13 = pneg %p901_p12  ;;  %s905_s1 = scalar_lea.vmem %s904_s4, 256 }
  0x2a   : > { %p906_p0 = scmp.lt.s32.totalorder %s203_s2, %s904_s4  ;;  %p907_p1 = scmp.lt.s32.totalorder %s905_s1, %s898_s8 }
  0x2c   : > { %p908_p3 = por %p907_p1, %p906_p0 }
  0x2e   : > { %p909_p4 = pnand %p908_p3, %p902_p13 }
  0x30   : > { %912 = shalt.err (!%p909_p4)
}
  0x31   : > { %s1529_s25 = smov 64   ;;  %s1531_s29 = smov 4  }
  0x32   : > { %740 = dma.hbm_to_vmem [thread:$0]  (!%p1273_p9), %s201_s24, 128, %s203_s2, %s1277_s5, %s1529_s25, %s1529_s25, %s1531_s29  }
  0x33   : > { %s1288_s6 = sadd.s32 4294967295, %s1119_s28   ;;  %s640_s9 = sadd.s32 4294967294, %s1119_s28  }
  0x34   : > { %p53_p7 = scmp.ne.s32.totalorder %s1095_s22, %s1091_s21  ;;  %p1534_p8 = scmp.eq.s32.totalorder %s1288_s6, 0 }
  0x35   : > { %s87_s10 = sadd.s32 1, %s1087_s20  ;;  %p94_p10 = scmp.ne.s32.totalorder %s1087_s20, %s1083_s19 }
  0x36   : > { %p1299_p11 = por %p1534_p8, %p53_p7  ;;  %p100_p12 = scmp.ne.s32.totalorder %s1083_s19, %s1079_s18 }
  0x37   : > { %s1308_s2 = scalar_select %p85_p5, %s1087_s20, %s87_s10  }
  0x38   : > { %p1312_p9 = por %p94_p10, %p48_p2  ;;  %p1318_p13 = por %p100_p12, %p1534_p8 }
  0x39   : > { %p151_p0 = scmp.ne.s32.totalorder %s1075_s17, %s1071_s16  ;;  %p152_p1 = scmp.eq.s32.totalorder %s1288_s6, 3 }
  0x3a   : > { %p157_p3 = scmp.ne.s32.totalorder %s1071_s16, %s1067_s15  ;;  %p158_p4 = scmp.eq.s32.totalorder %s640_s9, 3 }
  0x3b   : > { %p1327_p5 = por %p152_p1, %p151_p0  ;;  %p641_p2 = scmp.ge.s32.totalorder %s1119_s28, 1 }
  0x3c   : > { %p1332_p7 = por %p158_p4, %p157_p3  ;;  %p165_p10 = scmp.lt.s32.totalorder %s1119_s28, 5 }
  0x3d   : > { %s1555_s18 = scalar_select %p1327_p5, 1, 0 }
  0x3e   : > { %s1556_s7 = scalar_select %p1332_p7, 1, 0 }
  0x3f   : > { %p1337_p12 = pnand %p641_p2, %p165_p10  ;;  %s1124_s14 = smov [#allocation6]  }
  0x40   : > { %s177_s8 = sshll.u32 %s1124_s14, 4  ;;  %p1345_p0 = pnand %p749_p6, %p1312_p9  ;;  %s178_s8 = int_to_ptr.vmem [resolvable:$true] %s177_s8 }
  0x41   : > { %p733_p1 = pneg %p1337_p12  ;;  %s214_s4 = sand.u32 1, %s1087_s20  }
  0x42   : > { %s647_s1 = sshll.u32 %s214_s4, 5  ;;  %s648_s10 = sshll.u32 %s1111_s26, 6 }
  0x43   : > { %p1354_p3 = pnand %p733_p1, %p1534_p8  ;;  %s216_s25 = scalar_lea.vmem [#allocation8], %s647_s1 }
  0x44   : > { %s222_s14 = sshll.u32 %s216_s25, 4  ;;  %s1560_s0 = sld [smem:[#allocation23_spill]]  ;;  %s223_s14 = int_to_ptr.vmem [resolvable:$true] %s222_s14 }
  0x45   : > { %p915_p6 = pneg %p1354_p3  ;;  %s924_s12 = scalar_lea.vmem %s178_s8, 512 }
  0x46   : > { %p925_p9 = scmp.ne.s32.totalorder %s178_s8, %s924_s12  ;;  %p932_p10 = scmp.lt.s32.totalorder %s178_s8, %s178_s8 }
  0x47   : > { %p933_p1 = scmp.lt.s32.totalorder %s924_s12, %s924_s12 }
  0x48   : > { %p927_p4 = pnand %p925_p9, %p915_p6 }
  0x49   : > { %p934_p8 = por %p933_p1, %p932_p10 }
  0x4a   : > { %s1362_s27 = scalar_lea.hbm %s1560_s0, %s648_s10  ;;  %p928_p2 = pneg %p927_p4 }
  0x4c   : > { %p935_p7 = pnand %p934_p8, %p928_p2 }
  0x4e   : > { %938 = shalt.err (!%p935_p7)
}
  0x4f   : > { %s1561_s4 = smov 4   ;;  %s1562_s25 = smov 64  }
  0x50   : > { %s1563_s0 = sld [smem:[#allocation22_spill]]  ;;  %p941_p5 = pneg %p1345_p0 }
  0x51   : > { %s952_s10 = scalar_lea.vmem %s223_s14, 512  ;;  %s1125_s12 = smov [#allocation8]  }
  0x52   : > { %p953_p6 = scmp.ne.s32.totalorder %s223_s14, %s952_s10  ;;  %s957_s24 = sshll.u32 %s1125_s12, 4  ;;  %s958_s24 = int_to_ptr.vmem [resolvable:$false] %s957_s24 }
  0x53   : > { %s959_s26 = scalar_lea.vmem %s958_s24, 1024  ;;  %p960_p8 = scmp.lt.s32.totalorder %s223_s14, %s958_s24 }
  0x54   : > { %p955_p9 = pnand %p953_p6, %p941_p5  ;;  %p961_p7 = scmp.lt.s32.totalorder %s959_s26, %s952_s10 }
  0x56   : > { %736 = dma.hbm_to_vmem [thread:$0]  (!%p1354_p3), %s1563_s0, 512, %s178_s8, [#allocation7], %s1562_s25, %s1562_s25, %s1561_s4  }
  0x57   : > { %p956_p4 = pneg %p955_p9  ;;  %p962_p2 = por %p961_p7, %p960_p8 }
  0x59   : > { %p963_p10 = pnand %p962_p2, %p956_p4 }
  0x5b   : > { %966 = shalt.err (!%p963_p10)
}
  0x5c   : > { %s1126_s9 = smov 128   ;;  %240 = sbr.rel (%p1337_p12) target bundleno = 569 (0x239), region = 36 }
  0x5d   : > { %743 = dma.hbm_to_vmem [thread:$0]  (!%p1345_p0), %s1362_s27, 512, %s223_s14, %s1277_s5, %s1126_s9, %s1562_s25, %s1561_s4  }
  0x5e   : > { %s242_s8 = sand.u32 (!%p1337_p12), 1, %s1288_s6   ;;  %s244_s1 = sand.u32 (!%p1337_p12), 1, %s1095_s22  }
  0x5f   : > { %s1386_s26 = sshll.u32 (!%p1337_p12), %s244_s1, 3  ;;  %s243_s29 = scalar_lea.sflag (!%p1337_p12), [#allocation4], %s242_s8 }
  0x60   : > { %s246_s0 = scalar_lea.vmem (!%p1337_p12), [#allocation3], %s1386_s26 }
  0x61   : > { %1050 = dma.done.wait (%p1299_p11), %s243_s29, 128  }
  0x62   : > { %1052 = vsyncadd (%p1299_p11), %s243_s29, 4294967168  ;;  %p1564_p5 = scmp.eq.s32.totalorder %s1288_s6, 0 }
  0x64   : > { %1054 = dma.done.wait (%p1564_p5), [#allocation7], 512   ;;  %p1565_p12 = pmov %p1564_p5 }
  0x65   : > { %s257_s27 = sand.u32 1, %s1083_s19  }
  0x66   : > { %1056 = vsyncadd (%p1565_p12), [#allocation7], 4294966784  ;;  %s652_s5 = sshll.u32 %s257_s27, 5 }
  0x67   : > { %s1398_s11 = scalar_lea.vmem [#allocation8], %s652_s5 }
  0x68   : > { %1058 = dma.done.wait (%p1318_p13), %s243_s29, 512  }
  0x69   : > { %1060 = vsyncadd (%p1318_p13), %s243_s29, 4294966784  ;;  %s1566_s30 = sld [smem:[#allocation14_spill]]  ;;  %s289_s3 = sand.u32 1, %s1071_s16  }
  0x6a   : > { %s1408_s6 = sshll.u32 %s289_s3, 3  ;;  %s1567_s10 = sld [smem:[#allocation24_spill]] }
  0x6b   : > { %s291_s24 = scalar_lea.vmem [#allocation9], %s1408_s6 }
  0x6f   : > { %p293_p11 = scmp.lt.s32.totalorder %s1566_s30, 1  ;;  %p654_p13 = scmp.ne.s32.totalorder %s1566_s30, 0 }
  0x71   : > { %s1411_s14 = scalar_select %p293_p11, %s1566_s30, 1 }
  0x72   : > { %301 = sbr.rel (%p654_p13) target bundleno = 336 (0x150), region = 52 }
  0x73   : > { %s295_s12 = scalar_lea.vmem %s1567_s10, %s1411_s14 }
  0x77   : > { %v875_v0 = vld [vmem:[#allocation6 + $0x18] sm:$0xff]   ;;  %v1127_v1 = vmov 0.0   ;;  %v876_v2 = vld [vmem:[#allocation6 + $0x10] sm:$0xff]   ;;  %vm1128_vm0 = vmmov 0   ;;  %v877_v3 = vld [vmem:[#allocation6 + $0x8] sm:$0xff]   ;;  %vm341_vm1 = vcmask 523264  }
  0x78   : > { %699 = vmatprep.subr.bf16.mxu0 %v1127_v1  ;;  %707 = vmatprep.mubr.msk.bf16.mxu0 %vm1128_vm0, %v1127_v1  ;;  %v878_v4 = vld [vmem:[#allocation6] sm:$0xff]   ;;  %v879_v5 = vld [vmem:[%s246_s0] sm:$0xff]   ;;  %vm394_vm2 = vcmask 519168  }
  0x79   : > { %700 = vmatpush3.bf16.msra.mxu0 %v875_v0 }
  0x7a   : > { %701 = vmatprep.subr.bf16.mxu0 %v1127_v1 }
  0x7d   : > { %702 = vmatpush3.bf16.msra.mxu0 %v876_v2 }
  0x7e   : > { %703 = vmatprep.subr.bf16.mxu0 %v1127_v1 }
  0x81   : > { %704 = vmatpush3.bf16.msra.mxu0 %v877_v3 }
  0x82   : > { %705 = vmatprep.subr.bf16.mxu0 %v1127_v1 }
  0x85   : > { %706 = vmatpush3.bf16.msra.mxu0 %v878_v4 }
  0x88   : > { %708 = vmatmul.mubr.msk.bf16.vlgmr.msra.gmra.mxu0 %vm341_vm1, %v879_v5 }
 0x148   : > { %v379_v6 = vpop.f32.mrf.mxu0 }
 0x149   : > { %v679_v7 = vpack.c.bf16 %v379_v6, %v379_v6 }
 0x14a   : > { %v709_v8 = vpop.f32.mrf.mxu0 }
 0x14b   : > { %395 = vst.msk [vmem:[#allocation2] sm:$0xf] %vm394_vm2, %v679_v7 }
 0x14c   : > { %v382_v9 = vpop.f32.mrf.mxu0 }
 0x14d   : > { %v680_v10 = vpack.c.bf16 %v382_v9, %v382_v9 }
 0x14e   : > { %v710_v11 = vpop.f32.mrf.mxu0 }
 0x14f   : > { %396 = vst.msk [vmem:[#allocation2 + $0x4] sm:$0xf] %vm394_vm2, %v680_v10 }
 0x150 PF: > { %v880_v12 = vld [vmem:[%s1398_s11 + $0x18] sm:$0xff]   ;;  %v1129_v13 = vmov 0.0   ;;  %s1568_s21 = sld [smem:[#allocation15_spill]]  ;;  %v881_v14 = vld [vmem:[%s1398_s11 + $0x10] sm:$0xff]   ;;  %vm1130_vm3 = vmmov 0   ;;  %v882_v15 = vld [vmem:[%s1398_s11 + $0x8] sm:$0xff]  }
 0x151   : > { %711 = vmatprep.subr.bf16.mxu0 %v1129_v13  ;;  %s1569_s9 = sld [smem:[#allocation14_spill]]  ;;  %719 = vmatprep.mubr.msk.bf16.mxu0 %vm1130_vm3, %v1129_v13  ;;  %v883_v16 = vld [vmem:[%s1398_s11] sm:$0xff]   ;;  %vm443_vm4 = vcmask 523264   ;;  %v663_v19 = vld [vmem:[%s295_s12] ss:$0 sm:$0xff]  ;;  %s514_s5 = sshll.u32 %s291_s24, 4  ;;  %s1439_s5 = int_to_ptr.vmem [resolvable:$true] %s514_s5 }
 0x152   : > { %712 = vmatpush3.bf16.msra.mxu0 %v880_v12  ;;  %s1571_s4 = sld [smem:[#allocation25_spill]]  ;;  %s1445_s14 = scalar_lea.sflag [#allocation5], %s289_s3 }
 0x153   : > { %713 = vmatprep.subr.bf16.mxu0 %v1129_v13  ;;  %s967_s10 = scalar_lea.vmem %s1439_s5, 128  ;;  %p1572_p3 = scmp.ne.s32.totalorder %s1555_s18, 0 }
 0x154   : > { %p968_p0 = scmp.ne.s32.totalorder %s1439_s5, %s967_s10  ;;  %s1131_s12 = smov [#allocation9]  }
 0x156   : > { %714 = vmatpush3.bf16.msra.mxu0 %v881_v14  ;;  %v884_v17 = vld [vmem:[#allocation2] sm:$0xff]   ;;  %s683_s8 = sshll.u32 %s1568_s21, 2  ;;  %p969_p1 = pnand %p968_p0, %p1572_p3 }
 0x157   : > { %715 = vmatprep.subr.bf16.mxu0 %v1129_v13  ;;  %s511_s1 = sadd.s32 %s1569_s9, %s683_s8  ;;  %s971_s21 = sshll.u32 %s1131_s12, 4  ;;  %s972_s21 = int_to_ptr.vmem [resolvable:$false] %s971_s21 }
 0x158   : > { %s675_s27 = sshll.u32 %s511_s1, 6  ;;  %p970_p6 = pneg %p969_p1 }
 0x159   : > { %s1437_s25 = scalar_lea.hbm %s1571_s4, %s675_s27  ;;  %s973_s9 = scalar_lea.vmem %s972_s21, 256 }
 0x15a   : > { %716 = vmatpush3.bf16.msra.mxu0 %v882_v15  ;;  %p974_p9 = scmp.lt.s32.totalorder %s1439_s5, %s972_s21  ;;  %p975_p4 = scmp.lt.s32.totalorder %s973_s9, %s967_s10 }
 0x15b   : > { %717 = vmatprep.subr.bf16.mxu0 %v1129_v13 }
 0x15c   : > { %p976_p8 = por %p975_p4, %p974_p9 }
 0x15e   : > { %718 = vmatpush3.bf16.msra.mxu0 %v883_v16  ;;  %p977_p7 = pnand %p976_p8, %p970_p6 }
 0x161   : > { %720 = vmatmul.mubr.msk.bf16.vlgmr.msra.gmra.mxu0 %vm443_vm4, %v884_v17 }
 0x221   : > { %v481_v18 = vpop.f32.mrf.mxu0 }
 0x222   : > { %v482_v22 = vadd.f32 %v663_v19, %v481_v18 }
 0x223   : > { %v721_v20 = vpop.f32.mrf.mxu0 }
 0x225   : > { %v484_v21 = vpop.f32.mrf.mxu0 }
 0x226   : > { %v485_v23 = vadd.f32 %v663_v19, %v484_v21 }
 0x227   : > { %v722_v24 = vpop.f32.mrf.mxu0 }
 0x228   : > { %v687_v25 = vpack.c.bf16 %v485_v23, %v482_v22 }
 0x22a   : > { %688 = vst [vmem:[%s291_s24] sm:$0xff] %v687_v25  }
 0x22b   : > { %980 = shalt.err (!%p977_p7)
}
 0x22c   : > { %s981_s3 = scalar_lea.hbm %s1437_s25, 128  ;;  %s985_s8 = scalar_lea.hbm %s1571_s4, 512 }
 0x22d   : > { %p982_p2 = scmp.ne.s32.totalorder %s1437_s25, %s981_s3  ;;  %p986_p12 = scmp.lt.s32.totalorder %s1437_s25, %s1571_s4 }
 0x22e   : > { %p987_p11 = scmp.lt.s32.totalorder %s985_s8, %s981_s3 }
 0x22f   : > { %p983_p10 = pnand %p982_p2, %p1572_p3 }
 0x230   : > { %p988_p13 = por %p987_p11, %p986_p12 }
 0x231   : > { %p984_p5 = pneg %p983_p10 }
 0x233   : > { %p989_p0 = pnand %p988_p13, %p984_p5 }
 0x235   : > { %992 = shalt.err (!%p989_p0)
}
 0x236   : > { %s1132_s29 = smov 64   ;;  %s1133_s0 = smov 128  }
 0x237   : > { %s1134_s27 = smov 4  }
 0x238   : > { %731 = dma.vmem_to_hbm [thread:$0]  (%p1572_p3), %s1439_s5, 128, %s1437_s25, %s1445_s14, %s1132_s29, %s1133_s0, %s1134_s27  }
 0x239 PF: > { %p751_p1 = scmp.ge.s32.totalorder %s1119_s28, 2  ;;  %s529_s11 = sand.u32 1, %s1067_s15  }
 0x23a   : > { %p1573_p6 = scmp.ne.s32.totalorder %s1556_s7, 0  ;;  %s530_s30 = scalar_lea.sflag [#allocation5], %s529_s11 }
 0x23c   : > { %p745_p9 = pnand %p751_p1, %p1573_p6 }
 0x23e   : > { %p746_p4 = pneg %p745_p9 }
 0x240   : > { %1062 = dma.done.wait (%p746_p4), %s530_s30, 128  }
 0x241   : > { %1064 = vsyncadd (%p746_p4), %s530_s30, 4294967168  ;;  %s21_s28 = sadd.s32 1, %s1119_s28   ;;  %s1575_s7 = sld [smem:[#allocation20_spill]] }
 0x242   : > { %p1473_p8 = scmp.ge.s32.totalorder %s21_s28, 6   ;;  %s1576_s24 = sld [smem:[#allocation16_spill]] }
 0x243   : > { %s1577_s25 = sld [smem:[#allocation17_spill]]  ;;  %s1580_s15 = smov %s1071_s16 }
 0x244   : > { %s1578_s26 = sld [smem:[#allocation18_spill]]  ;;  %s1581_s16 = smov %s1075_s17 }
 0x245   : > { %s1579_s27 = sld [smem:[#allocation19_spill]]  ;;  %s1582_s17 = smov %s1262_s13 }
 0x246   : > { %s1583_s18 = smov %s1083_s19  ;;  %s1584_s19 = smov %s1087_s20 }
 0x247   : > { %s1585_s20 = smov %s1308_s2  ;;  %s1586_s21 = smov %s1095_s22 }
 0x248   : > { %s1587_s22 = smov %s1099_s23  ;;  %s1588_s23 = smov %s1575_s7 }
 0x249   :  { %20 = sbr.rel (!%p1473_p8) target bundleno = 17 (0x11), region = 103 }
 0x24e   :  { %535 = vsyncpa [#allocation4], 1 }
 0x24f   :  { %537 = vsyncpa [#allocation4 + $0x1], 1 }
 0x250   :  { %538 = vsyncpa [#allocation7], 1 }
 0x251   :  { %539 = vsyncpa [#allocation5], 1 }
 0x252   :  { %541 = vsyncpa [#allocation5 + $0x1], 1 }

// kernel: tpu_custom_call.1
= control target key start
LH: loop header
LB: loop body
LE: loop exit
PB: predicated region body
PF: predicated region fallthrough
CT: control target
= control target key end

     0   :  { %s1520_s0 = inlined_call_operand.hbm [shape: bf16[32,64], index: 0, kind: input, shape index: {}]   ;;  %s1521_s1 = inlined_call_operand.hbm [shape: bf16[64,64], index: 1, kind: input, shape index: {}]   ;;  %s1522_s2 = inlined_call_operand.hbm [shape: bf16[64,256], index: 2, kind: input, shape index: {}]   ;;  %s1523_s3 = inlined_call_operand.vmem [shape: f32[1,256], index: 3, kind: input, shape index: {}]   ;;  %s1524_s4 = inlined_call_operand.hbm [shape: bf16[32,256], index: 4, kind: output, shape index: {}]  }
   0x1   :  { %1537 = sst [smem:[#allocation21_spill]] %s1520_s0 }
   0x2   :  { %1538 = sst [smem:[#allocation22_spill]] %s1521_s1 }
   0x3   :  { %1539 = sst [smem:[#allocation23_spill]] %s1522_s2 }
   0x4   :  { %1540 = sst [smem:[#allocation24_spill]] %s1523_s3 }
   0x5   :  { %1541 = sst [smem:[#allocation25_spill]] %s1524_s4 }
   0x6   :  { %9 = vsyncpa [#allocation4], 0 }
   0x7   :  { %11 = vsyncpa [#allocation4 + $0x1], 0 }
   0x8   :  { %12 = vsyncpa [#allocation7], 0 }
   0x9   :  { %13 = vsyncpa [#allocation5], 0 }
   0xa   :  { %15 = vsyncpa [#allocation5 + $0x1], 0  ;;  %s1160_s15 = smov 0   ;;  %s1162_s16 = smov 0  }
   0xb   :  { %s1164_s17 = smov 0   ;;  %s1166_s18 = smov 0  }
   0xc   :  { %s1168_s19 = smov 0   ;;  %s1170_s20 = smov 0  }
   0xd   :  { %s1172_s21 = smov 0   ;;  %s1174_s22 = smov 0  }
   0xe   :  { %s1176_s23 = smov 0   ;;  %s1178_s24 = smov 0  }
   0xf   :  { %s1180_s25 = smov 0   ;;  %s1182_s26 = smov 0  }
  0x10   :  { %s1184_s27 = smov 0   ;;  %s1186_s28 = smov 0  }
  0x11 LB: > { %1542 = sst [smem:[#allocation14_spill]] %s1103_s24  ;;  %s30_s29 = sadd.s32 1, %s1111_s26  ;;  %s1119_s28 = sphi %s1186_s28, %s21_s28   ;;  %s1115_s27 = sphi %s1184_s27, %s1579_s27   ;;  %s1111_s26 = sphi %s1182_s26, %s1578_s26   ;;  %s1107_s25 = sphi %s1180_s25, %s1577_s25   ;;  %s1103_s24 = sphi %s1178_s24, %s1576_s24   ;;  %s1099_s23 = sphi %s1176_s23, %s1588_s23   ;;  %s1095_s22 = sphi %s1174_s22, %s1587_s22   ;;  %s1091_s21 = sphi %s1172_s21, %s1586_s21   ;;  %s1087_s20 = sphi %s1170_s20, %s1585_s20   ;;  %s1083_s19 = sphi %s1168_s19, %s1584_s19   ;;  %s1079_s18 = sphi %s1166_s18, %s1583_s18   ;;  %s1075_s17 = sphi %s1164_s17, %s1582_s17   ;;  %s1071_s16 = sphi %s1162_s16, %s1581_s16   ;;  %s1067_s15 = sphi %s1160_s15, %s1580_s15  }
  0x12   : > { %1543 = sst [smem:[#allocation15_spill]] %s1107_s25  ;;  %s33_s30 = sadd.s32 1, %s1115_s27 }
  0x13   : > { %1544 = sst [smem:[#allocation16_spill]] %s1111_s26  ;;  %p31_p0 = scmp.ge.s32.totalorder %s30_s29, 2 }
  0x14   : > { %1545 = sst [smem:[#allocation17_spill]] %s1115_s27  ;;  %s40_s5 = sadd.s32 1, %s1099_s23 }
  0x15   : > { %p47_p1 = scmp.ne.s32.totalorder %s1099_s23, %s1095_s22  ;;  %p48_p2 = scmp.eq.s32.totalorder %s1119_s28, 0 }
  0x16   : > { %s1590_s29 = smov (%p31_p0, %s30_s29), 0  ;;  %s1592_s30 = smov (!%p31_p0, %s33_s30), %s1115_s27 }
  0x17   : > { %1546 = sst [smem:[#allocation18_spill]] %s1590_s29  ;;  %p1241_p3 = por %p48_p2, %p47_p1 }
  0x18   : > { %s1247_s7 = ssub.s32 %s1111_s26, %s1590_s29  ;;  %p35_p4 = scmp.ge.s32.totalorder %s1592_s30, 2 }
  0x19   : > { %p85_p5 = scmp.eq.s32.totalorder %s1247_s7, 0  ;;  %s141_s8 = sadd.s32 1, %s1075_s17 }
  0x1a   : > { %s1594_s30 = smov (%p35_p4, %s1592_s30), 0  ;;  %p749_p6 = scmp.lt.s32.totalorder %s1119_s28, 4 }
  0x1b   : > { %1548 = sst [smem:[#allocation19_spill]] %s1594_s30  ;;  %s37_s9 = ssub.s32 %s1115_s27, %s1594_s30 }
  0x1c   : > { %p38_p7 = scmp.eq.s32.totalorder %s37_s9, 0  ;;  %s138_s10 = sor.u32 %s1247_s7, %s37_s9 }
  0x1d   : > { %p139_p8 = scmp.eq.s32.totalorder %s138_s10, 0  ;;  %s191_s11 = sand.u32 1, %s1119_s28  }
  0x1e   : > { %s1259_s12 = scalar_select %p38_p7, %s1099_s23, %s40_s5  }
  0x1f   : > { %s1262_s13 = scalar_select %p139_p8, %s1075_s17, %s141_s8  }
  0x20   : > { %1549 = sst [smem:[#allocation20_spill]] %s1259_s12  ;;  %s193_s14 = sand.u32 1, %s1099_s23  }
  0x21   : > { %s644_s29 = sshll.u32 %s193_s14, 3  ;;  %s678_s4 = sshll.u32 %s1115_s27, 7 }
  0x22   : > { %s1550_s0 = sld [smem:[#allocation21_spill]]  ;;  %s195_s1 = scalar_lea.vmem [#allocation3], %s644_s29 }
  0x23   : > { %s202_s2 = sshll.u32 %s195_s1, 4  ;;  %p1273_p9 = pnand %p749_p6, %p1241_p3  ;;  %s203_s2 = int_to_ptr.vmem [resolvable:$true] %s202_s2 }
  0x24   : > { %s1277_s5 = scalar_lea.sflag [#allocation4], %s191_s11  ;;  %s898_s8 = scalar_lea.vmem %s203_s2, 128 }
  0x25   : > { %p887_p10 = pneg %p1273_p9  ;;  %p899_p11 = scmp.ne.s32.totalorder %s203_s2, %s898_s8 }
  0x26   : > { %s1121_s3 = smov [#allocation3]  }
  0x27   : > { %p901_p12 = pnand %p899_p11, %p887_p10 }
  0x28   : > { %s201_s24 = scalar_lea.hbm %s1550_s0, %s678_s4  ;;  %s903_s4 = sshll.u32 %s1121_s3, 4  ;;  %s904_s4 = int_to_ptr.vmem [resolvable:$false] %s903_s4 }
  0x29   : > { %p902_p13 = pneg %p901_p12  ;;  %s905_s1 = scalar_lea.vmem %s904_s4, 256 }
  0x2a   : > { %p906_p0 = scmp.lt.s32.totalorder %s203_s2, %s904_s4  ;;  %p907_p1 = scmp.lt.s32.totalorder %s905_s1, %s898_s8 }
  0x2c   : > { %p908_p3 = por %p907_p1, %p906_p0 }
  0x2e   : > { %p909_p4 = pnand %p908_p3, %p902_p13 }
  0x30   : > { %912 = shalt.err (!%p909_p4)
}
  0x31   : > { %s1529_s25 = smov 64   ;;  %s1531_s29 = smov 4  }
  0x32   : > { %740 = dma.hbm_to_vmem [thread:$0]  (!%p1273_p9), %s201_s24, 128, %s203_s2, %s1277_s5, %s1529_s25, %s1529_s25, %s1531_s29  }
  0x33   : > { %s1288_s6 = sadd.s32 4294967295, %s1119_s28   ;;  %s640_s9 = sadd.s32 4294967294, %s1119_s28  }
  0x34   : > { %p53_p7 = scmp.ne.s32.totalorder %s1095_s22, %s1091_s21  ;;  %p1534_p8 = scmp.eq.s32.totalorder %s1288_s6, 0 }
  0x35   : > { %s87_s10 = sadd.s32 1, %s1087_s20  ;;  %p94_p10 = scmp.ne.s32.totalorder %s1087_s20, %s1083_s19 }
  0x36   : > { %p1299_p11 = por %p1534_p8, %p53_p7  ;;  %p100_p12 = scmp.ne.s32.totalorder %s1083_s19, %s1079_s18 }
  0x37   : > { %s1308_s2 = scalar_select %p85_p5, %s1087_s20, %s87_s10  }
  0x38   : > { %p1312_p9 = por %p94_p10, %p48_p2  ;;  %p1318_p13 = por %p100_p12, %p1534_p8 }
  0x39   : > { %p151_p0 = scmp.ne.s32.totalorder %s1075_s17, %s1071_s16  ;;  %p152_p1 = scmp.eq.s32.totalorder %s1288_s6, 3 }
  0x3a   : > { %p157_p3 = scmp.ne.s32.totalorder %s1071_s16, %s1067_s15  ;;  %p158_p4 = scmp.eq.s32.totalorder %s640_s9, 3 }
  0x3b   : > { %p1327_p5 = por %p152_p1, %p151_p0  ;;  %p641_p2 = scmp.ge.s32.totalorder %s1119_s28, 1 }
  0x3c   : > { %p1332_p7 = por %p158_p4, %p157_p3  ;;  %p165_p10 = scmp.lt.s32.totalorder %s1119_s28, 5 }
  0x3d   : > { %s1555_s18 = scalar_select %p1327_p5, 1, 0 }
  0x3e   : > { %s1556_s7 = scalar_select %p1332_p7, 1, 0 }
  0x3f   : > { %p1337_p12 = pnand %p641_p2, %p165_p10  ;;  %s1124_s14 = smov [#allocation6]  }
  0x40   : > { %s177_s8 = sshll.u32 %s1124_s14, 4  ;;  %p1345_p0 = pnand %p749_p6, %p1312_p9  ;;  %s178_s8 = int_to_ptr.vmem [resolvable:$true] %s177_s8 }
  0x41   : > { %p733_p1 = pneg %p1337_p12  ;;  %s214_s4 = sand.u32 1, %s1087_s20  }
  0x42   : > { %s647_s1 = sshll.u32 %s214_s4, 5  ;;  %s648_s10 = sshll.u32 %s1111_s26, 6 }
  0x43   : > { %p1354_p3 = pnand %p733_p1, %p1534_p8  ;;  %s216_s25 = scalar_lea.vmem [#allocation8], %s647_s1 }
  0x44   : > { %s222_s14 = sshll.u32 %s216_s25, 4  ;;  %s1560_s0 = sld [smem:[#allocation23_spill]]  ;;  %s223_s14 = int_to_ptr.vmem [resolvable:$true] %s222_s14 }
  0x45   : > { %p915_p6 = pneg %p1354_p3  ;;  %s924_s12 = scalar_lea.vmem %s178_s8, 512 }
  0x46   : > { %p925_p9 = scmp.ne.s32.totalorder %s178_s8, %s924_s12  ;;  %p932_p10 = scmp.lt.s32.totalorder %s178_s8, %s178_s8 }
  0x47   : > { %p933_p1 = scmp.lt.s32.totalorder %s924_s12, %s924_s12 }
  0x48   : > { %p927_p4 = pnand %p925_p9, %p915_p6 }
  0x49   : > { %p934_p8 = por %p933_p1, %p932_p10 }
  0x4a   : > { %s1362_s27 = scalar_lea.hbm %s1560_s0, %s648_s10  ;;  %p928_p2 = pneg %p927_p4 }
  0x4c   : > { %p935_p7 = pnand %p934_p8, %p928_p2 }
  0x4e   : > { %938 = shalt.err (!%p935_p7)
}
  0x4f   : > { %s1561_s4 = smov 4   ;;  %s1562_s25 = smov 64  }
  0x50   : > { %s1563_s0 = sld [smem:[#allocation22_spill]]  ;;  %p941_p5 = pneg %p1345_p0 }
  0x51   : > { %s952_s10 = scalar_lea.vmem %s223_s14, 512  ;;  %s1125_s12 = smov [#allocation8]  }
  0x52   : > { %p953_p6 = scmp.ne.s32.totalorder %s223_s14, %s952_s10  ;;  %s957_s24 = sshll.u32 %s1125_s12, 4  ;;  %s958_s24 = int_to_ptr.vmem [resolvable:$false] %s957_s24 }
  0x53   : > { %s959_s26 = scalar_lea.vmem %s958_s24, 1024  ;;  %p960_p8 = scmp.lt.s32.totalorder %s223_s14, %s958_s24 }
  0x54   : > { %p955_p9 = pnand %p953_p6, %p941_p5  ;;  %p961_p7 = scmp.lt.s32.totalorder %s959_s26, %s952_s10 }
  0x56   : > { %736 = dma.hbm_to_vmem [thread:$0]  (!%p1354_p3), %s1563_s0, 512, %s178_s8, [#allocation7], %s1562_s25, %s1562_s25, %s1561_s4  }
  0x57   : > { %p956_p4 = pneg %p955_p9  ;;  %p962_p2 = por %p961_p7, %p960_p8 }
  0x59   : > { %p963_p10 = pnand %p962_p2, %p956_p4 }
  0x5b   : > { %966 = shalt.err (!%p963_p10)
}
  0x5c   : > { %s1126_s9 = smov 128   ;;  %240 = sbr.rel (%p1337_p12) target bundleno = 569 (0x239), region = 36 }
  0x5d   : > { %743 = dma.hbm_to_vmem [thread:$0]  (!%p1345_p0), %s1362_s27, 512, %s223_s14, %s1277_s5, %s1126_s9, %s1562_s25, %s1561_s4  }
  0x5e   : > { %s242_s8 = sand.u32 (!%p1337_p12), 1, %s1288_s6   ;;  %s244_s1 = sand.u32 (!%p1337_p12), 1, %s1095_s22  }
  0x5f   : > { %s1386_s26 = sshll.u32 (!%p1337_p12), %s244_s1, 3  ;;  %s243_s29 = scalar_lea.sflag (!%p1337_p12), [#allocation4], %s242_s8 }
  0x60   : > { %s246_s0 = scalar_lea.vmem (!%p1337_p12), [#allocation3], %s1386_s26 }
  0x61   : > { %1050 = dma.done.wait (%p1299_p11), %s243_s29, 128  }
  0x62   : > { %1052 = vsyncadd (%p1299_p11), %s243_s29, 4294967168  ;;  %p1564_p5 = scmp.eq.s32.totalorder %s1288_s6, 0 }
  0x64   : > { %1054 = dma.done.wait (%p1564_p5), [#allocation7], 512   ;;  %p1565_p12 = pmov %p1564_p5 }
  0x65   : > { %s257_s27 = sand.u32 1, %s1083_s19  }
  0x66   : > { %1056 = vsyncadd (%p1565_p12), [#allocation7], 4294966784  ;;  %s652_s5 = sshll.u32 %s257_s27, 5 }
  0x67   : > { %s1398_s11 = scalar_lea.vmem [#allocation8], %s652_s5 }
  0x68   : > { %1058 = dma.done.wait (%p1318_p13), %s243_s29, 512  }
  0x69   : > { %1060 = vsyncadd (%p1318_p13), %s243_s29, 4294966784  ;;  %s1566_s30 = sld [smem:[#allocation14_spill]]  ;;  %s289_s3 = sand.u32 1, %s1071_s16  }
  0x6a   : > { %s1408_s6 = sshll.u32 %s289_s3, 3  ;;  %s1567_s10 = sld [smem:[#allocation24_spill]] }
  0x6b   : > { %s291_s24 = scalar_lea.vmem [#allocation9], %s1408_s6 }
  0x6f   : > { %p293_p11 = scmp.lt.s32.totalorder %s1566_s30, 1  ;;  %p654_p13 = scmp.ne.s32.totalorder %s1566_s30, 0 }
  0x71   : > { %s1411_s14 = scalar_select %p293_p11, %s1566_s30, 1 }
  0x72   : > { %301 = sbr.rel (%p654_p13) target bundleno = 336 (0x150), region = 52 }
  0x73   : > { %s295_s12 = scalar_lea.vmem %s1567_s10, %s1411_s14 }
  0x77   : > { %v875_v0 = vld [vmem:[#allocation6 + $0x18] sm:$0xff]   ;;  %v1127_v1 = vmov 0.0   ;;  %v876_v2 = vld [vmem:[#allocation6 + $0x10] sm:$0xff]   ;;  %vm1128_vm0 = vmmov 0   ;;  %v877_v3 = vld [vmem:[#allocation6 + $0x8] sm:$0xff]   ;;  %vm341_vm1 = vcmask 523264  }
  0x78   : > { %699 = vmatprep.subr.bf16.mxu0 %v1127_v1  ;;  %707 = vmatprep.mubr.msk.bf16.mxu0 %vm1128_vm0, %v1127_v1  ;;  %v878_v4 = vld [vmem:[#allocation6] sm:$0xff]   ;;  %v879_v5 = vld [vmem:[%s246_s0] sm:$0xff]   ;;  %vm394_vm2 = vcmask 519168  }
  0x79   : > { %700 = vmatpush3.bf16.msra.mxu0 %v875_v0 }
  0x7a   : > { %701 = vmatprep.subr.bf16.mxu0 %v1127_v1 }
  0x7d   : > { %702 = vmatpush3.bf16.msra.mxu0 %v876_v2 }
  0x7e   : > { %703 = vmatprep.subr.bf16.mxu0 %v1127_v1 }
  0x81   : > { %704 = vmatpush3.bf16.msra.mxu0 %v877_v3 }
  0x82   : > { %705 = vmatprep.subr.bf16.mxu0 %v1127_v1 }
  0x85   : > { %706 = vmatpush3.bf16.msra.mxu0 %v878_v4 }
  0x88   : > { %708 = vmatmul.mubr.msk.bf16.vlgmr.msra.gmra.mxu0 %vm341_vm1, %v879_v5 }
 0x148   : > { %v379_v6 = vpop.f32.mrf.mxu0 }
 0x149   : > { %v679_v7 = vpack.c.bf16 %v379_v6, %v379_v6 }
 0x14a   : > { %v709_v8 = vpop.f32.mrf.mxu0 }
 0x14b   : > { %395 = vst.msk [vmem:[#allocation2] sm:$0xf] %vm394_vm2, %v679_v7 }
 0x14c   : > { %v382_v9 = vpop.f32.mrf.mxu0 }
 0x14d   : > { %v680_v10 = vpack.c.bf16 %v382_v9, %v382_v9 }
 0x14e   : > { %v710_v11 = vpop.f32.mrf.mxu0 }
 0x14f   : > { %396 = vst.msk [vmem:[#allocation2 + $0x4] sm:$0xf] %vm394_vm2, %v680_v10 }
 0x150 PF: > { %v880_v12 = vld [vmem:[%s1398_s11 + $0x18] sm:$0xff]   ;;  %v1129_v13 = vmov 0.0   ;;  %s1568_s21 = sld [smem:[#allocation15_spill]]  ;;  %v881_v14 = vld [vmem:[%s1398_s11 + $0x10] sm:$0xff]   ;;  %vm1130_vm3 = vmmov 0   ;;  %v882_v15 = vld [vmem:[%s1398_s11 + $0x8] sm:$0xff]  }
 0x151   : > { %711 = vmatprep.subr.bf16.mxu0 %v1129_v13  ;;  %s1569_s9 = sld [smem:[#allocation14_spill]]  ;;  %719 = vmatprep.mubr.msk.bf16.mxu0 %vm1130_vm3, %v1129_v13  ;;  %v883_v16 = vld [vmem:[%s1398_s11] sm:$0xff]   ;;  %vm443_vm4 = vcmask 523264   ;;  %v663_v19 = vld [vmem:[%s295_s12] ss:$0 sm:$0xff]  ;;  %s514_s5 = sshll.u32 %s291_s24, 4  ;;  %s1439_s5 = int_to_ptr.vmem [resolvable:$true] %s514_s5 }
 0x152   : > { %712 = vmatpush3.bf16.msra.mxu0 %v880_v12  ;;  %s1571_s4 = sld [smem:[#allocation25_spill]]  ;;  %s1445_s14 = scalar_lea.sflag [#allocation5], %s289_s3 }
 0x153   : > { %713 = vmatprep.subr.bf16.mxu0 %v1129_v13  ;;  %s967_s10 = scalar_lea.vmem %s1439_s5, 128  ;;  %p1572_p3 = scmp.ne.s32.totalorder %s1555_s18, 0 }
 0x154   : > { %p968_p0 = scmp.ne.s32.totalorder %s1439_s5, %s967_s10  ;;  %s1131_s12 = smov [#allocation9]  }
 0x156   : > { %714 = vmatpush3.bf16.msra.mxu0 %v881_v14  ;;  %v884_v17 = vld [vmem:[#allocation2] sm:$0xff]   ;;  %s683_s8 = sshll.u32 %s1568_s21, 2  ;;  %p969_p1 = pnand %p968_p0, %p1572_p3 }
 0x157   : > { %715 = vmatprep.subr.bf16.mxu0 %v1129_v13  ;;  %s511_s1 = sadd.s32 %s1569_s9, %s683_s8  ;;  %s971_s21 = sshll.u32 %s1131_s12, 4  ;;  %s972_s21 = int_to_ptr.vmem [resolvable:$false] %s971_s21 }
 0x158   : > { %s675_s27 = sshll.u32 %s511_s1, 6  ;;  %p970_p6 = pneg %p969_p1 }
 0x159   : > { %s1437_s25 = scalar_lea.hbm %s1571_s4, %s675_s27  ;;  %s973_s9 = scalar_lea.vmem %s972_s21, 256 }
 0x15a   : > { %716 = vmatpush3.bf16.msra.mxu0 %v882_v15  ;;  %p974_p9 = scmp.lt.s32.totalorder %s1439_s5, %s972_s21  ;;  %p975_p4 = scmp.lt.s32.totalorder %s973_s9, %s967_s10 }
 0x15b   : > { %717 = vmatprep.subr.bf16.mxu0 %v1129_v13 }
 0x15c   : > { %p976_p8 = por %p975_p4, %p974_p9 }
 0x15e   : > { %718 = vmatpush3.bf16.msra.mxu0 %v883_v16  ;;  %p977_p7 = pnand %p976_p8, %p970_p6 }
 0x161   : > { %720 = vmatmul.mubr.msk.bf16.vlgmr.msra.gmra.mxu0 %vm443_vm4, %v884_v17 }
 0x221   : > { %v481_v18 = vpop.f32.mrf.mxu0 }
 0x222   : > { %v482_v22 = vadd.f32 %v663_v19, %v481_v18 }
 0x223   : > { %v721_v20 = vpop.f32.mrf.mxu0 }
 0x225   : > { %v484_v21 = vpop.f32.mrf.mxu0 }
 0x226   : > { %v485_v23 = vadd.f32 %v663_v19, %v484_v21 }
 0x227   : > { %v722_v24 = vpop.f32.mrf.mxu0 }
 0x228   : > { %v687_v25 = vpack.c.bf16 %v485_v23, %v482_v22 }
 0x22a   : > { %688 = vst [vmem:[%s291_s24] sm:$0xff] %v687_v25  }
 0x22b   : > { %980 = shalt.err (!%p977_p7)
}
 0x22c   : > { %s981_s3 = scalar_lea.hbm %s1437_s25, 128  ;;  %s985_s8 = scalar_lea.hbm %s1571_s4, 512 }
 0x22d   : > { %p982_p2 = scmp.ne.s32.totalorder %s1437_s25, %s981_s3  ;;  %p986_p12 = scmp.lt.s32.totalorder %s1437_s25, %s1571_s4 }
 0x22e   : > { %p987_p11 = scmp.lt.s32.totalorder %s985_s8, %s981_s3 }
 0x22f   : > { %p983_p10 = pnand %p982_p2, %p1572_p3 }
 0x230   : > { %p988_p13 = por %p987_p11, %p986_p12 }
 0x231   : > { %p984_p5 = pneg %p983_p10 }
 0x233   : > { %p989_p0 = pnand %p988_p13, %p984_p5 }
 0x235   : > { %992 = shalt.err (!%p989_p0)
}
 0x236   : > { %s1132_s29 = smov 64   ;;  %s1133_s0 = smov 128  }
 0x237   : > { %s1134_s27 = smov 4  }
 0x238   : > { %731 = dma.vmem_to_hbm [thread:$0]  (%p1572_p3), %s1439_s5, 128, %s1437_s25, %s1445_s14, %s1132_s29, %s1133_s0, %s1134_s27  }
 0x239 PF: > { %p751_p1 = scmp.ge.s32.totalorder %s1119_s28, 2  ;;  %s529_s11 = sand.u32 1, %s1067_s15  }
 0x23a   : > { %p1573_p6 = scmp.ne.s32.totalorder %s1556_s7, 0  ;;  %s530_s30 = scalar_lea.sflag [#allocation5], %s529_s11 }
 0x23c   : > { %p745_p9 = pnand %p751_p1, %p1573_p6 }
 0x23e   : > { %p746_p4 = pneg %p745_p9 }
 0x240   : > { %1062 = dma.done.wait (%p746_p4), %s530_s30, 128  }
 0x241   : > { %1064 = vsyncadd (%p746_p4), %s530_s30, 4294967168  ;;  %s21_s28 = sadd.s32 1, %s1119_s28   ;;  %s1575_s7 = sld [smem:[#allocation20_spill]] }
 0x242   : > { %p1473_p8 = scmp.ge.s32.totalorder %s21_s28, 6   ;;  %s1576_s24 = sld [smem:[#allocation16_spill]] }
 0x243   : > { %s1577_s25 = sld [smem:[#allocation17_spill]]  ;;  %s1580_s15 = smov %s1071_s16 }
 0x244   : > { %s1578_s26 = sld [smem:[#allocation18_spill]]  ;;  %s1581_s16 = smov %s1075_s17 }
 0x245   : > { %s1579_s27 = sld [smem:[#allocation19_spill]]  ;;  %s1582_s17 = smov %s1262_s13 }
 0x246   : > { %s1583_s18 = smov %s1083_s19  ;;  %s1584_s19 = smov %s1087_s20 }
 0x247   : > { %s1585_s20 = smov %s1308_s2  ;;  %s1586_s21 = smov %s1095_s22 }
 0x248   : > { %s1587_s22 = smov %s1099_s23  ;;  %s1588_s23 = smov %s1575_s7 }
 0x249   :  { %20 = sbr.rel (!%p1473_p8) target bundleno = 17 (0x11), region = 103 }
 0x24e   :  { %535 = vsyncpa [#allocation4], 1 }
 0x24f   :  { %537 = vsyncpa [#allocation4 + $0x1], 1 }
 0x250   :  { %538 = vsyncpa [#allocation7], 1 }
 0x251   :  { %539 = vsyncpa [#allocation5], 1 }
 0x252   :  { %541 = vsyncpa [#allocation5 + $0x1], 1 }

</bundles_post_ra>
